<compile_context>
chip_gen: v6e
topology: v6e:2x2x1
jax: 0.10.0
libtpu: 0.0.40
codegen_flags: <defaults>
</compile_context>

<pallas_src>
import functools

import jax
import jax.numpy as jnp
from jax import lax
from jax.experimental import pallas as pl
from jax.experimental.pallas import tpu as pltpu


# ---------------------------------------------------------------------------
# Kernel 1: row-blocked L2 normalization  (F.normalize(feats, p=2, dim=1))
# ---------------------------------------------------------------------------
def _l2norm_kernel(f_ref, out_ref):
    f = f_ref[...].astype(jnp.float32)                       # (TM, D)
    ssq = jnp.sum(f * f, axis=1, keepdims=True)              # (TM, 1)
    # f / max(||f||, 1e-12)  ==  f * rsqrt(max(||f||^2, 1e-24))  (EUP rsqrt, VPU mul)
    out_ref[...] = f * lax.rsqrt(jnp.maximum(ssq, jnp.float32(1e-24)))


# ---------------------------------------------------------------------------
# Kernel 2: tiled soft-ncut reductions (one row block of A per grid step)
#   fn_ref  : (TM, D)      f32   normalized feature rows of this block
#   ft_ref  : (D, N_pad)   f32   resident normalized features, transposed
#   rhs_ref : (N_pad, 128) bf16  resident; col 0 = x, col 1 = valid, rest 0
#   rows_ref: (TM, 128)    bf16  row-block slice of rhs (x / valid for these rows)
#   out_ref : (1, 8, 128)  f32   lanes 0/1/2 of sublane 0 hold cutAB/assocAV/assocBV
# ---------------------------------------------------------------------------
def _ncut_tiled_kernel(fn_ref, ft_ref, rhs_ref, rows_ref, out_ref, *, tau, eps):
    # (TM, N_pad) slice of cosine similarities on the MXU (f32 accumulate).
    s = lax.dot_general(
        fn_ref[...], ft_ref[...],
        dimension_numbers=(((1,), (0,)), ((), ())),
        preferred_element_type=jnp.float32,
    )

    # A = (s > tau) ? 1.0 : eps ; values {1.0, eps} are safe to carry in bf16.
    a = jnp.where(s > tau, jnp.float32(1.0), jnp.float32(eps)).astype(jnp.bfloat16)

    # One fused 128-lane-wide MXU pass replaces the two (N,1) matvecs.
    # Padded columns have x = valid = 0, so they contribute nothing.
    y = lax.dot_general(
        a, rhs_ref[...],
        dimension_numbers=(((1,), (0,)), ((), ())),
        preferred_element_type=jnp.float32,
    )                                                        # (TM, 128) f32
    ax = y[:, 0:1]          # rows of A @ x
    av = y[:, 1:2]          # rows of A @ 1   (over real columns only)
    a1mx = av - ax          # rows of A @ (1 - x)

    rows = rows_ref[...].astype(jnp.float32)                 # (TM, 128)
    x_blk = rows[:, 0:1]
    v_blk = rows[:, 1:2]                                     # 0 on padded rows

    cut = jnp.sum(v_blk * (1.0 - x_blk) * ax)                # (1-x) @ (A @ x)  (partial)
    a_av = jnp.sum(v_blk * ax)                               # sum(A @ x)       (partial)
    a_bv = jnp.sum(v_blk * a1mx)                             # sum(A @ (1-x))   (partial)

    lane = lax.broadcasted_iota(jnp.int32, (8, 128), 1)
    tile = jnp.where(lane == 0, cut,
           jnp.where(lane == 1, a_av,
           jnp.where(lane == 2, a_bv, jnp.float32(0.0))))
    out_ref[...] = tile[None]                                # lane-dense (1, 8, 128)


# ---------------------------------------------------------------------------
# Wrapper: soft_ncut_value
# ---------------------------------------------------------------------------
def soft_ncut_value_pallas(feats, mask_flat, *, tau, eps, block_rows=256):
    """feats: (1, n_tokens, D); mask_flat: (N,) with N == n_tokens - 1."""
    f = feats[0, 1:, :].astype(jnp.float32)                  # drop CLS token (glue)
    N, D = f.shape
    x = mask_flat.astype(jnp.float32).reshape(N)

    # Row-block size / padding (TM multiple of 128; N_pad multiple of TM).
    lane_pad = ((N + 127) // 128) * 128
    TM = min(int(block_rows), lane_pad)
    N_pad = ((N + TM - 1) // TM) * TM
    num_blocks = N_pad // TM
    pad = N_pad - N

    f_p = jnp.pad(f, ((0, pad), (0, 0)))                     # zero rows -> masked out
    x_p = jnp.pad(x, (0, pad))
    valid = (jnp.arange(N_pad) < N).astype(jnp.float32)

    # --- L2 normalization (Pallas, row-blocked) ---
    f_norm = pl.pallas_call(
        _l2norm_kernel,
        out_shape=jax.ShapeDtypeStruct((N_pad, D), jnp.float32),
        grid=(num_blocks,),
        in_specs=[pl.BlockSpec((TM, D), lambda i: (i, 0))],
        out_specs=pl.BlockSpec((TM, D), lambda i: (i, 0)),
        compiler_params=pltpu.CompilerParams(dimension_semantics=("parallel",)),
    )(f_p)

    # Resident lane-dense f^T operand for the standard ((1,),(0,)) contraction.
    # Pure layout plumbing (no compute) in the wrapper.
    f_t = jnp.transpose(f_norm)                              # (D, N_pad)

    # Combined RHS: col 0 = x, col 1 = valid, rest 0. bf16 is exact for binary masks.
    # TODO(synk): for non-binary (soft) masks bf16 carries ~3 significant digits.
    lane = jnp.arange(128)[None, :]
    rhs = jnp.where(lane == 0, x_p[:, None],
          jnp.where(lane == 1, valid[:, None], 0.0)).astype(jnp.bfloat16)  # (N_pad, 128)

    flops = 2 * N_pad * N_pad * D + 2 * N_pad * N_pad * 128
    bytes_accessed = 8 * N_pad * D + 4 * N_pad * 128 + num_blocks * 8 * 128 * 4

    partials = pl.pallas_call(
        functools.partial(_ncut_tiled_kernel, tau=float(tau), eps=float(eps)),
        out_shape=jax.ShapeDtypeStruct((num_blocks, 8, 128), jnp.float32),
        grid=(num_blocks,),
        in_specs=[
            pl.BlockSpec((TM, D), lambda i: (i, 0)),          # f_norm row block
            pl.BlockSpec((D, N_pad), lambda i: (0, 0)),       # f_norm^T (resident)
            pl.BlockSpec((N_pad, 128), lambda i: (0, 0)),     # rhs (resident)
            pl.BlockSpec((TM, 128), lambda i: (i, 0)),        # rhs row block (x/valid)
        ],
        out_specs=pl.BlockSpec((1, 8, 128), lambda i: (i, 0, 0)),
        compiler_params=pltpu.CompilerParams(
            dimension_semantics=("parallel",),                # shards row blocks on v7x
            vmem_limit_bytes=48 * 1024 * 1024),
        cost_estimate=pl.CostEstimate(
            flops=int(flops), transcendentals=0, bytes_accessed=int(bytes_accessed)),
    )(f_norm, f_t, rhs, rhs)

    cut_ab = jnp.sum(partials[:, 0, 0])
    assoc_av = jnp.sum(partials[:, 0, 1])
    assoc_bv = jnp.sum(partials[:, 0, 2])
    ncut = cut_ab / assoc_av + cut_ab / assoc_bv
    return ncut.reshape(1)                                    # matches ncut_value[None]


# ---------------------------------------------------------------------------
# Glue reproducing the NCutEvalHead forward around the kernels
# ---------------------------------------------------------------------------
class NCutEvalHeadPallas:
    def __init__(self, resize_imgs_size=(64, 128), patch_size=8,
                 tau=0.2, eps=1e-5,
                 mean=(0.485, 0.456, 0.406), std=(0.229, 0.224, 0.225)):
        self.tau = tau
        self.eps = eps
        self.patch_size = patch_size
        self.h_featuremap = resize_imgs_size[0] // patch_size
        self.w_featuremap = resize_imgs_size[1] // patch_size
        # deterministic "parameters" from __init__ (used only on the image path)
        self.mean = jnp.asarray(mean, jnp.float32)[None, :, None, None]
        self.std = jnp.asarray(std, jnp.float32)[None, :, None, None]

    @staticmethod
    def _nearest_resize(m, out_h, out_w):
        # torch F.interpolate(mode='nearest'): src index = floor(dst * in/out)
        B, H, W = m.shape
        ri = jnp.floor(jnp.arange(out_h) * (H / out_h)).astype(jnp.int32)
        ci = jnp.floor(jnp.arange(out_w) * (W / out_w)).astype(jnp.int32)
        return m[:, ri][:, :, ci]

    def forward(self, feats, masks):
        # TODO(synk): imgs -> bilinear resize -> DINO ViT -> qkv 'k' features is an
        #             external pretrained backbone; `feats` is taken as input here
        #             with the same (1, n_tokens, D) contract.
        masks_small = self._nearest_resize(masks, self.h_featuremap,
                                           self.w_featuremap)
        mask_flat = masks_small.reshape(-1).astype(jnp.float32)
        return soft_ncut_value_pallas(feats, mask_flat,
                                      tau=self.tau, eps=self.eps)


# ---------------------------------------------------------------------------
# Pure-JAX reference of soft_ncut_value (for correctness check)
# ---------------------------------------------------------------------------
def soft_ncut_value_ref(feats, mask_flat, tau, eps):
    f = feats[0, 1:, :].astype(jnp.float32)
    norm = jnp.sqrt(jnp.sum(f * f, axis=1, keepdims=True))
    f = f / jnp.maximum(norm, 1e-12)
    A = jnp.dot(f, f.T, precision=lax.Precision.HIGHEST)
    A = jnp.where(A > tau, 1.0, eps)
    x = mask_flat.astype(jnp.float32)
    Ax = jnp.dot(A, x, precision=lax.Precision.HIGHEST)
    A1mx = jnp.dot(A, 1.0 - x, precision=lax.Precision.HIGHEST)
    cutAB = jnp.sum((1.0 - x) * Ax)
    assocAV = jnp.sum(Ax)
    assocBV = jnp.sum(A1mx)
    return cutAB / assocAV + cutAB / assocBV


if __name__ == "__main__":
    key = jax.random.PRNGKey(0)
    k1, k2, k3, k4 = jax.random.split(key, 4)
    D = 32

    # Tolerance note: MXU f32-emulation vs HIGHEST-precision reference can flip a
    # rare similarity that sits within ~1e-6 of tau, and eps=1e-5 is carried in
    # bf16 inside the kernel; both effects stay well inside 2e-3 relative.

    # --- Case 1: feature map 8x16 -> N = 128 patch tokens (+ CLS) ---
    head = NCutEvalHeadPallas(resize_imgs_size=(64, 128), patch_size=8)
    n_tok = head.h_featuremap * head.w_featuremap + 1          # 129
    feats = jax.random.normal(k1, (1, n_tok, D), jnp.float32)
    masks = (jax.random.uniform(k2, (1, 16, 32)) > 0.5).astype(jnp.float32)
    out = jax.block_until_ready(head.forward(feats, masks))
    m_small = NCutEvalHeadPallas._nearest_resize(
        masks, head.h_featuremap, head.w_featuremap)
    ref = soft_ncut_value_ref(feats, m_small.reshape(-1), head.tau, head.eps)
    assert out.shape == (1,)
    assert jnp.allclose(out[0], ref, rtol=2e-3, atol=2e-3), (out, ref)

    # --- Case 2: N = 120 (not a multiple of 128) exercises the padding path ---
    head2 = NCutEvalHeadPallas(resize_imgs_size=(64, 120), patch_size=8)
    n_tok2 = head2.h_featuremap * head2.w_featuremap + 1       # 121
    feats2 = jax.random.normal(k3, (1, n_tok2, D), jnp.float32)
    masks2 = (jax.random.uniform(k4, (1, 16, 30)) > 0.5).astype(jnp.float32)
    out2 = jax.block_until_ready(head2.forward(feats2, masks2))
    m2_small = NCutEvalHeadPallas._nearest_resize(
        masks2, head2.h_featuremap, head2.w_featuremap)
    ref2 = soft_ncut_value_ref(feats2, m2_small.reshape(-1), head2.tau, head2.eps)
    assert out2.shape == (1,)
    assert jnp.allclose(out2[0], ref2, rtol=2e-3, atol=2e-3), (out2, ref2)

    print("KERNEL_OK")
</pallas_src>

<mosaic_0001>
module attributes {stable_mosaic.version = 11 : i64} {
  func.func @_l2norm_kernel(%arg0: i32, %arg1: memref<128x32xf32, #tpu.memory_space<vmem>>, %arg2: memref<128x32xf32, #tpu.memory_space<vmem>>) attributes {dimension_semantics = [#tpu.dimension_semantics<parallel>], iteration_bounds = array<i64: 1>, scalar_prefetch = 0 : i64, scratch_operands = 0 : i64, tpu.core_type = #tpu.core_type<tc>, window_params = [{transform_indices = @transform_0, window_bounds = array<i64: 128, 32>}, {transform_indices = @transform_1, window_bounds = array<i64: 128, 32>}]} {
    %c0 = arith.constant 0 : index
    %c0_0 = arith.constant 0 : index
    %0 = vector.load %arg1[%c0, %c0_0] : memref<128x32xf32, #tpu.memory_space<vmem>>, vector<128x32xf32>
    %1 = arith.mulf %0, %0 : vector<128x32xf32>
    %cst = arith.constant dense<0.000000e+00> : vector<128xf32>
    %2 = vector.multi_reduction <add>, %1, %cst [1] : vector<128x32xf32> to vector<128xf32>
    %3 = vector.shape_cast %2 : vector<128xf32> to vector<128x1xf32>
    %cst_1 = arith.constant 1.000000e-24 : f32
    %4 = vector.broadcast %cst_1 : f32 to vector<128x1xf32>
    %5 = arith.maximumf %3, %4 : vector<128x1xf32>
    %6 = math.rsqrt %5 : vector<128x1xf32>
    %7 = vector.broadcast %6 : vector<128x1xf32> to vector<128x32xf32>
    %8 = arith.mulf %0, %7 : vector<128x32xf32>
    %c0_2 = arith.constant 0 : index
    %c0_3 = arith.constant 0 : index
    %9 = vector.load %arg2[%c0_2, %c0_3] : memref<128x32xf32, #tpu.memory_space<vmem>>, vector<128x32xf32>
    tpu.vector_store %arg2[%c0_2, %c0_3], %8 {strides = array<i32>} : memref<128x32xf32, #tpu.memory_space<vmem>>, vector<128x32xf32>,
    return
  }
  func.func @transform_0(%arg0: i32) -> (i32, i32) {
    %c0_i32 = arith.constant 0 : i32
    %c0_i32_0 = arith.constant 0 : i32
    return %arg0, %c0_i32 : i32, i32
  }
  func.func @transform_1(%arg0: i32) -> (i32, i32) {
    %c0_i32 = arith.constant 0 : i32
    %c0_i32_0 = arith.constant 0 : i32
    return %arg0, %c0_i32 : i32, i32
  }
}

</mosaic_0001>

<bundles_post_ra>
// kernel: tpu_custom_call.1
= control target key start
LH: loop header
LB: loop body
LE: loop exit
PB: predicated region body
PF: predicated region fallthrough
CT: control target
= control target key end

     0   :  { %vm40_vm0 = vcmask 261120   ;;  %s407_s0 = inlined_call_operand.vmem [shape: f32[128,32], index: 0, kind: input, shape index: {}]   ;;  %s408_s1 = inlined_call_operand.vmem [shape: f32[128,32], index: 1, kind: output, shape index: {}]  }
   0x1   :  { %v202_v0 = vld [vmem:[%s407_s0 + $0x10] sm:$0xff]  ;;  %v207_v1 = vld [vmem:[%s407_s0] sm:$0xff]  ;;  %v212_v2 = vld [vmem:[%s407_s0 + $0x18] sm:$0xff] }
   0x2   :  { %v26_v3 = vmul.f32 %v202_v0, %v202_v0  ;;  %v24_v4 = vmul.f32 %v207_v1, %v207_v1  ;;  %v27_v5 = vmul.f32 %v212_v2, %v212_v2  ;;  %v223_v6 = vld [vmem:[%s407_s0 + $0x8] sm:$0xff]  ;;  %v235_v9 = vld [vmem:[%s407_s0 + $0x20] sm:$0xff]  ;;  %v248_v16 = vld [vmem:[%s407_s0 + $0x38] sm:$0xff] }
   0x3   :  { %v25_v7 = vmul.f32 %v223_v6, %v223_v6  ;;  %v230_v8 = vld [vmem:[%s407_s0 + $0x28] sm:$0xff]  ;;  %v28_v15 = vmul.f32 %v235_v9, %v235_v9  ;;  %v253_v17 = vld [vmem:[%s407_s0 + $0x30] sm:$0xff]  ;;  %v31_v20 = vmul.f32 %v248_v16, %v248_v16  ;;  %v269_v23 = vld [vmem:[%s407_s0 + $0x40] sm:$0xff] }
   0x4   :  { %v47_v10 = vsel %vm40_vm0, %v26_v3, 0.0  ;;  %v41_v11 = vsel %vm40_vm0, %v24_v4, 0.0  ;;  %v50_v12 = vsel %vm40_vm0, %v27_v5, 0.0  ;;  %v29_v14 = vmul.f32 %v230_v8, %v230_v8  ;;  %v264_v22 = vld [vmem:[%s407_s0 + $0x48] sm:$0xff]  ;;  %v280_v28 = vld [vmem:[%s407_s0 + $0x58] sm:$0xff]  ;;  %v285_v29 = vld [vmem:[%s407_s0 + $0x50] sm:$0xff] }
   0x5   :  { %48 = vadd.xlane.f32.xlu1 %v47_v10  ;;  %42 = vadd.xlane.f32.xlu0 %v41_v11  ;;  %v44_v13 = vsel %vm40_vm0, %v25_v7, 0.0  ;;  %v53_v19 = vsel %vm40_vm0, %v28_v15, 0.0  ;;  %v30_v21 = vmul.f32 %v253_v17, %v253_v17  ;;  %v62_v24 = vsel %vm40_vm0, %v31_v20, 0.0  ;;  %v296_v34 = vld [vmem:[%s407_s0 + $0x68] sm:$0xff]  ;;  %v301_v35 = vld [vmem:[%s407_s0 + $0x60] sm:$0xff]  ;;  %v312_v40 = vld [vmem:[%s407_s0 + $0x78] sm:$0xff] }
   0x6   :  { %v56_v18 = vsel %vm40_vm0, %v29_v14, 0.0  ;;  %v33_v26 = vmul.f32 %v264_v22, %v264_v22  ;;  %v32_v27 = vmul.f32 %v269_v23, %v269_v23  ;;  %v35_v32 = vmul.f32 %v280_v28, %v280_v28  ;;  %v317_v41 = vld [vmem:[%s407_s0 + $0x70] sm:$0xff] }
   0x7   :  { %v59_v25 = vsel %vm40_vm0, %v30_v21, 0.0  ;;  %v34_v33 = vmul.f32 %v285_v29, %v285_v29  ;;  %v37_v38 = vmul.f32 %v296_v34, %v296_v34  ;;  %v36_v39 = vmul.f32 %v301_v35, %v301_v35 }
   0x8   :  { %v68_v30 = vsel %vm40_vm0, %v33_v26, 0.0  ;;  %v65_v31 = vsel %vm40_vm0, %v32_v27, 0.0  ;;  %v74_v36 = vsel %vm40_vm0, %v35_v32, 0.0  ;;  %v39_v44 = vmul.f32 %v312_v40, %v312_v40 }
   0x9   :  { %51 = vadd.xlane.f32.xlu1 %v50_v12  ;;  %45 = vadd.xlane.f32.xlu0 %v44_v13  ;;  %v71_v37 = vsel %vm40_vm0, %v34_v33, 0.0  ;;  %v80_v42 = vsel %vm40_vm0, %v37_v38, 0.0  ;;  %v77_v43 = vsel %vm40_vm0, %v36_v39, 0.0  ;;  %v38_v45 = vmul.f32 %v317_v41, %v317_v41 }
   0xa   :  { %v86_v46 = vsel %vm40_vm0, %v39_v44, 0.0 }
   0xb   :  { %v83_v47 = vsel %vm40_vm0, %v38_v45, 0.0 }
   0xd   :  { %57 = vadd.xlane.f32.xlu1 %v56_v18  ;;  %54 = vadd.xlane.f32.xlu0 %v53_v19 }
  0x11   :  { %63 = vadd.xlane.f32.xlu1 %v62_v24  ;;  %60 = vadd.xlane.f32.xlu0 %v59_v25 }
  0x15   :  { %69 = vadd.xlane.f32.xlu1 %v68_v30  ;;  %66 = vadd.xlane.f32.xlu0 %v65_v31 }
  0x19   :  { %75 = vadd.xlane.f32.xlu1 %v74_v36  ;;  %72 = vadd.xlane.f32.xlu0 %v71_v37 }
  0x1d   :  { %81 = vadd.xlane.f32.xlu1 %v80_v42  ;;  %78 = vadd.xlane.f32.xlu0 %v77_v43 }
  0x21   :  { %87 = vadd.xlane.f32.xlu1 %v86_v46  ;;  %84 = vadd.xlane.f32.xlu0 %v83_v47 }
  0x8e   :  { %v49_v48 = vpop.xlane.xlu1 %48  ;;  %v43_v49 = vpop.xlane.xlu0 %42 }
  0x8f   :  { %v91_v50 = vmax.f32 %v49_v48, 1e-24  ;;  %v89_v51 = vmax.f32 %v43_v49, 1e-24 }
  0x91   :  { %157 = vrsqrt.f32 %v91_v50 }
  0x92   :  { %159 = vrsqrt.f32 %v89_v51  ;;  %v52_v52 = vpop.xlane.xlu1 %51  ;;  %v46_v53 = vpop.xlane.xlu0 %45 }
  0x93   :  { %v92_v54 = vmax.f32 %v52_v52, 1e-24  ;;  %v90_v55 = vmax.f32 %v46_v53, 1e-24 }
  0x95   :  { %161 = vrsqrt.f32 %v92_v54 }
  0x96   :  { %163 = vrsqrt.f32 %v90_v55  ;;  %v58_v56 = vpop.xlane.xlu1 %57  ;;  %v55_v57 = vpop.xlane.xlu0 %54 }
  0x97   :  { %v94_v58 = vmax.f32 %v58_v56, 1e-24  ;;  %v93_v59 = vmax.f32 %v55_v57, 1e-24 }
  0x99   :  { %165 = vrsqrt.f32 %v94_v58 }
  0x9a   :  { %167 = vrsqrt.f32 %v93_v59  ;;  %v64_v60 = vpop.xlane.xlu1 %63  ;;  %v61_v61 = vpop.xlane.xlu0 %60 }
  0x9b   :  { %v96_v62 = vmax.f32 %v64_v60, 1e-24  ;;  %v95_v63 = vmax.f32 %v61_v61, 1e-24 }
  0x9d   :  { %169 = vrsqrt.f32 %v96_v62 }
  0x9e   :  { %v158_v3 = vpop.eup %157  ;;  %171 = vrsqrt.f32 %v95_v63  ;;  %v70_v4 = vpop.xlane.xlu1 %69 }
  0x9f   :  { %v67_v5 = vpop.xlane.xlu0 %66  ;;  %v160_v7 = vpop.eup %159  ;;  %v123_v10 = vmul.f32 %v158_v3, %v202_v0  ;;  %v98_v11 = vmax.f32 %v70_v4, 1e-24 }
  0xa0   :  { %v97_v12 = vmax.f32 %v67_v5, 1e-24  ;;  %v121_v13 = vmul.f32 %v160_v7, %v207_v1 }
  0xa1   :  { %139 = vst.msk [vmem:[%s408_s1 + $0x10] sm:$0xff] %vm40_vm0, %v123_v10  ;;  %173 = vrsqrt.f32 %v98_v11 }
  0xa2   :  { %v162_v14 = vpop.eup %161  ;;  %137 = vst.msk [vmem:[%s408_s1] sm:$0xff] %vm40_vm0, %v121_v13  ;;  %175 = vrsqrt.f32 %v97_v12  ;;  %v76_v15 = vpop.xlane.xlu1 %75 }
  0xa3   :  { %v73_v18 = vpop.xlane.xlu0 %72  ;;  %v164_v0 = vpop.eup %163  ;;  %v124_v19 = vmul.f32 %v162_v14, %v212_v2  ;;  %v100_v20 = vmax.f32 %v76_v15, 1e-24 }
  0xa4   :  { %v99_v1 = vmax.f32 %v73_v18, 1e-24  ;;  %v122_v21 = vmul.f32 %v164_v0, %v223_v6 }
  0xa5   :  { %140 = vst.msk [vmem:[%s408_s1 + $0x18] sm:$0xff] %vm40_vm0, %v124_v19  ;;  %177 = vrsqrt.f32 %v100_v20 }
  0xa6   :  { %v166_v24 = vpop.eup %165  ;;  %138 = vst.msk [vmem:[%s408_s1 + $0x8] sm:$0xff] %vm40_vm0, %v122_v21  ;;  %179 = vrsqrt.f32 %v99_v1  ;;  %v82_v25 = vpop.xlane.xlu1 %81 }
  0xa7   :  { %v79_v26 = vpop.xlane.xlu0 %78  ;;  %v168_v2 = vpop.eup %167  ;;  %v126_v27 = vmul.f32 %v166_v24, %v230_v8  ;;  %v102_v30 = vmax.f32 %v82_v25, 1e-24 }
  0xa8   :  { %v101_v6 = vmax.f32 %v79_v26, 1e-24  ;;  %v125_v31 = vmul.f32 %v168_v2, %v235_v9 }
  0xa9   :  { %142 = vst.msk [vmem:[%s408_s1 + $0x28] sm:$0xff] %vm40_vm0, %v126_v27  ;;  %181 = vrsqrt.f32 %v102_v30 }
  0xaa   :  { %v170_v32 = vpop.eup %169  ;;  %141 = vst.msk [vmem:[%s408_s1 + $0x20] sm:$0xff] %vm40_vm0, %v125_v31  ;;  %183 = vrsqrt.f32 %v101_v6  ;;  %v88_v33 = vpop.xlane.xlu1 %87 }
  0xab   :  { %v85_v36 = vpop.xlane.xlu0 %84  ;;  %v172_v8 = vpop.eup %171  ;;  %v128_v37 = vmul.f32 %v170_v32, %v248_v16  ;;  %v104_v38 = vmax.f32 %v88_v33, 1e-24 }
  0xac   :  { %v103_v9 = vmax.f32 %v85_v36, 1e-24  ;;  %v127_v39 = vmul.f32 %v172_v8, %v253_v17 }
  0xad   :  { %144 = vst.msk [vmem:[%s408_s1 + $0x38] sm:$0xff] %vm40_vm0, %v128_v37  ;;  %185 = vrsqrt.f32 %v104_v38 }
  0xae   :  { %v174_v42 = vpop.eup %173  ;;  %143 = vst.msk [vmem:[%s408_s1 + $0x30] sm:$0xff] %vm40_vm0, %v127_v39  ;;  %187 = vrsqrt.f32 %v103_v9 }
  0xaf   :  { %v176_v43 = vpop.eup %175  ;;  %v130_v16 = vmul.f32 %v174_v42, %v264_v22 }
  0xb0   :  { %v129_v44 = vmul.f32 %v176_v43, %v269_v23 }
  0xb1   :  { %146 = vst.msk [vmem:[%s408_s1 + $0x48] sm:$0xff] %vm40_vm0, %v130_v16 }
  0xb2   :  { %v178_v17 = vpop.eup %177  ;;  %145 = vst.msk [vmem:[%s408_s1 + $0x40] sm:$0xff] %vm40_vm0, %v129_v44 }
  0xb3   :  { %v180_v45 = vpop.eup %179  ;;  %v132_v46 = vmul.f32 %v178_v17, %v280_v28 }
  0xb4   :  { %v131_v47 = vmul.f32 %v180_v45, %v285_v29 }
  0xb5   :  { %148 = vst.msk [vmem:[%s408_s1 + $0x58] sm:$0xff] %vm40_vm0, %v132_v46 }
  0xb6   :  { %v182_v22 = vpop.eup %181  ;;  %147 = vst.msk [vmem:[%s408_s1 + $0x50] sm:$0xff] %vm40_vm0, %v131_v47 }
  0xb7   :  { %v184_v23 = vpop.eup %183  ;;  %v134_v48 = vmul.f32 %v182_v22, %v296_v34 }
  0xb8   :  { %v133_v49 = vmul.f32 %v184_v23, %v301_v35 }
  0xb9   :  { %150 = vst.msk [vmem:[%s408_s1 + $0x68] sm:$0xff] %vm40_vm0, %v134_v48 }
  0xba   :  { %v186_v28 = vpop.eup %185  ;;  %149 = vst.msk [vmem:[%s408_s1 + $0x60] sm:$0xff] %vm40_vm0, %v133_v49 }
  0xbb   :  { %v188_v29 = vpop.eup %187  ;;  %v136_v50 = vmul.f32 %v186_v28, %v312_v40 }
  0xbc   :  { %v135_v51 = vmul.f32 %v188_v29, %v317_v41 }
  0xbd   :  { %152 = vst.msk [vmem:[%s408_s1 + $0x78] sm:$0xff] %vm40_vm0, %v136_v50 }
  0xbe   :  { %151 = vst.msk [vmem:[%s408_s1 + $0x70] sm:$0xff] %vm40_vm0, %v135_v51 }

</bundles_post_ra>
